<compile_context>
chip_gen: v6e
topology: v6e:2x2x1
jax: 0.10.0
libtpu: 0.0.40
codegen_flags: <defaults>
</compile_context>

<pallas_src>
import functools

import jax
import jax.numpy as jnp
from jax import lax
from jax.experimental import pallas as pl
from jax.experimental.pallas import tpu as pltpu


def _round_up(v, m):
    return (v + m - 1) // m * m


# ---------------------------------------------------------------------------
# Pallas kernel: full conditional-mapping MLP on one (tile_m, D) row slab.
# ---------------------------------------------------------------------------
def _mapping_kernel(num_layers,
                    x_ref, ctx_ref,            # (tile, in_dim) bf16, (tile, ctx_dim) bf16
                    wi_ref, bi_ref,            # (in_dim, Hp) bf16, (1, Hp) f32
                    wc_ref, bc_ref,            # (ctx_dim, Hp) bf16, (1, Hp) f32
                    rbw1_ref, rbb1_ref,        # (L, Hp, Hp) bf16, (L, 1, Hp) f32
                    rbw2_ref, rbb2_ref,        # (L, Hp, Hp) bf16, (L, 1, Hp) f32
                    wo_ref, bo_ref,            # (Hp, Op) bf16, (1, Op) f32
                    o_ref):                    # (tile, Op) f32
    x = x_ref[...]
    ctx = ctx_ref[...]

    # bf16 MXU matmuls with f32 accumulation; all elementwise math in f32.
    h = jnp.dot(x, wi_ref[...], preferred_element_type=jnp.float32) + bi_ref[...]
    h = h + (jnp.dot(ctx, wc_ref[...], preferred_element_type=jnp.float32) + bc_ref[...])

    def layer(l, h):
        z = jnp.dot(h.astype(jnp.bfloat16), rbw1_ref[l],
                    preferred_element_type=jnp.float32) + rbb1_ref[l]
        z = jnp.maximum(z, 0.0)
        # TODO(synk): nn.Dropout is identity at inference (eval mode); training-mode
        # dropout is not implemented in this kernel.
        return jnp.dot(z.astype(jnp.bfloat16), rbw2_ref[l],
                       preferred_element_type=jnp.float32) + rbb2_ref[l] + h

    if num_layers <= 8:
        # Small L: static unroll (static weight indices, best LLO scheduling).
        for l in range(num_layers):
            h = layer(l, h)
    else:
        # Large L: cap code size / vreg pressure with a real loop and dynamic
        # leading-axis indexing of the stacked layer weights.
        h = lax.fori_loop(0, num_layers, layer, h)

    out = jnp.dot(h.astype(jnp.bfloat16), wo_ref[...],
                  preferred_element_type=jnp.float32) + bo_ref[...]
    o_ref[...] = jnp.maximum(out, 0.0).astype(o_ref.dtype)


def _const_spec(shape):
    nd = len(shape)
    return pl.BlockSpec(shape, lambda i, _nd=nd: (0,) * _nd)


def _pad_and_cast_params(params):
    """Zero-pad hidden/output dims to multiples of 128; weights -> bf16, biases f32."""
    wi, bi, wc, bc, rbw1, rbb1, rbw2, rbb2, wo, bo = params
    hidden = wi.shape[1]
    out_dim = wo.shape[1]
    h_pad = _round_up(hidden, 128)
    o_pad = _round_up(out_dim, 128)
    ph = h_pad - hidden
    po = o_pad - out_dim
    bf = jnp.bfloat16

    wi_p = jnp.pad(wi, ((0, 0), (0, ph))).astype(bf)
    bi_p = jnp.pad(bi, ((0, 0), (0, ph)))
    wc_p = jnp.pad(wc, ((0, 0), (0, ph))).astype(bf)
    bc_p = jnp.pad(bc, ((0, 0), (0, ph)))
    rbw1_p = jnp.pad(rbw1, ((0, 0), (0, ph), (0, ph))).astype(bf)
    rbb1_p = jnp.pad(rbb1, ((0, 0), (0, 0), (0, ph)))
    rbw2_p = jnp.pad(rbw2, ((0, 0), (0, ph), (0, ph))).astype(bf)
    rbb2_p = jnp.pad(rbb2, ((0, 0), (0, 0), (0, ph)))
    wo_p = jnp.pad(wo, ((0, ph), (0, po))).astype(bf)
    bo_p = jnp.pad(bo, ((0, 0), (0, po)))

    weights = (wi_p, bi_p, wc_p, bc_p, rbw1_p, rbb1_p, rbw2_p, rbb2_p, wo_p, bo_p)
    return weights, hidden, h_pad, out_dim, o_pad


def _run_mapping_mlp(x_flat, ctx_flat, params, num_layers, tile_m):
    n, in_dim = x_flat.shape
    ctx_dim = ctx_flat.shape[1]
    weights, _, h_pad, out_dim, o_pad = _pad_and_cast_params(params)

    # Row tiling: as large as reasonable (>=512 rows hits ~85% of HBM roofline),
    # multiple of 8 sublanes, padded rows sliced off afterwards.
    tile = _round_up(max(8, min(int(tile_m), _round_up(n, 8))), 8)
    n_pad = _round_up(n, tile)

    x_bf = x_flat.astype(jnp.bfloat16)
    ctx_bf = ctx_flat.astype(jnp.bfloat16)
    if n_pad != n:
        x_bf = jnp.pad(x_bf, ((0, n_pad - n), (0, 0)))
        ctx_bf = jnp.pad(ctx_bf, ((0, n_pad - n), (0, 0)))

    grid = (n_pad // tile,)
    row_map = lambda i: (i, 0)

    in_specs = [pl.BlockSpec((tile, in_dim), row_map),
                pl.BlockSpec((tile, ctx_dim), row_map)]
    in_specs += [_const_spec(w.shape) for w in weights]
    out_spec = pl.BlockSpec((tile, o_pad), row_map)

    # VMEM budget (Pallas double-buffers each spec) with headroom, clamped so it
    # also fits v7x's 64 MiB physical VMEM.
    w_bytes = sum(int(w.size) * w.dtype.itemsize for w in weights)
    io_bytes = tile * (in_dim + ctx_dim) * 2 + tile * o_pad * 4
    vmem_needed = 2 * (w_bytes + io_bytes) + 6 * tile * h_pad * 4 + (2 << 20)
    vmem_limit = int(min(max(vmem_needed, 16 << 20), 48 << 20))

    flops = 2 * n_pad * (in_dim * h_pad + ctx_dim * h_pad
                         + 2 * num_layers * h_pad * h_pad + h_pad * o_pad)
    bytes_accessed = n_pad * (in_dim + ctx_dim) * 2 + n_pad * o_pad * 4 + w_bytes
    cost = pl.CostEstimate(flops=int(flops), transcendentals=0,
                           bytes_accessed=int(bytes_accessed))

    out = pl.pallas_call(
        functools.partial(_mapping_kernel, num_layers),
        out_shape=jax.ShapeDtypeStruct((n_pad, o_pad), jnp.float32),
        grid_spec=pltpu.PrefetchScalarGridSpec(
            num_scalar_prefetch=0,
            grid=grid,
            in_specs=in_specs,
            out_specs=out_spec,
        ),
        compiler_params=pltpu.CompilerParams(
            dimension_semantics=("parallel",),   # megacore-shardable row axis (v7x)
            vmem_limit_bytes=vmem_limit),
        cost_estimate=cost,
    )(x_bf, ctx_bf, *weights)

    return out[:n, :out_dim]


# ---------------------------------------------------------------------------
# Module-equivalent wrapper (mirrors the PyTorch forward layout glue).
# ---------------------------------------------------------------------------
def simple_conditional_mapping(x, context, params, num_layers, tile_m=512):
    b, c, num_blocks, p_area = context.shape
    _, _, x_num_blocks, x_p_area = x.shape
    assert num_blocks % x_num_blocks == 0, "num_blocks must be divisible by x_num_blocks"

    n = int(b * x_num_blocks)
    in_dim = int(x_p_area * c)
    ctx_dim = int((num_blocks // x_num_blocks) * p_area * c)

    # (B, C, NB, PA) -> (B, NB, C, PA) -> (N, D): one fused transpose+reshape per
    # tensor, no HBM-round-trip squeeze (robust even when N == 1, unlike .squeeze()).
    x_flat = jnp.transpose(x, (0, 2, 1, 3)).reshape(n, in_dim)
    ctx_flat = jnp.transpose(context, (0, 2, 1, 3)).reshape(n, ctx_dim)

    out = _run_mapping_mlp(x_flat, ctx_flat, params, num_layers, tile_m)
    return out.reshape(b, num_blocks * 4, -1)


# ---------------------------------------------------------------------------
# Deterministic parameter init (PyTorch Linear-style uniform +-1/sqrt(fan_in)).
# Weights stored pre-transposed as (fan_in, fan_out) so the kernel does x @ W.
# ---------------------------------------------------------------------------
def init_params(key, patch_size, channels, context_dim, hidden_dim, num_layers):
    input_dim = int(patch_size ** 2 * channels)
    output_dim = int(input_dim * 3)

    def linear(k, fan_in, fan_out):
        kw, kb = jax.random.split(k)
        bound = float(fan_in) ** -0.5
        w = jax.random.uniform(kw, (fan_in, fan_out), jnp.float32, -bound, bound)
        b = jax.random.uniform(kb, (1, fan_out), jnp.float32, -bound, bound)
        return w, b

    keys = jax.random.split(key, 3 + 2 * num_layers)
    wi, bi = linear(keys[0], input_dim, hidden_dim)
    wc, bc = linear(keys[1], context_dim, hidden_dim)

    w1s, b1s, w2s, b2s = [], [], [], []
    for l in range(num_layers):
        w1, b1 = linear(keys[2 + 2 * l], hidden_dim, hidden_dim)
        w2, b2 = linear(keys[3 + 2 * l], hidden_dim, hidden_dim)
        w1s.append(w1); b1s.append(b1); w2s.append(w2); b2s.append(b2)
    rbw1 = jnp.stack(w1s); rbb1 = jnp.stack(b1s)
    rbw2 = jnp.stack(w2s); rbb2 = jnp.stack(b2s)

    wo, bo = linear(keys[-1], hidden_dim, output_dim)
    return (wi, bi, wc, bc, rbw1, rbb1, rbw2, rbb2, wo, bo)


# ---------------------------------------------------------------------------
# Pure-JAX references.
# ---------------------------------------------------------------------------
def _flatten_inputs(x, context):
    b, c, num_blocks, p_area = context.shape
    _, _, x_num_blocks, x_p_area = x.shape
    xf = jnp.transpose(x, (0, 2, 1, 3)).reshape(b * x_num_blocks, x_p_area * c)
    cf = jnp.transpose(context, (0, 2, 1, 3)).reshape(b * x_num_blocks, -1)
    return xf, cf, b, num_blocks


def _reference_f32(x, context, params, num_layers):
    wi, bi, wc, bc, rbw1, rbb1, rbw2, rbb2, wo, bo = params
    xf, cf, b, num_blocks = _flatten_inputs(x, context)
    h = xf @ wi + bi + (cf @ wc + bc)
    for l in range(num_layers):
        z = jnp.maximum(h @ rbw1[l] + rbb1[l], 0.0)
        h = z @ rbw2[l] + rbb2[l] + h
    out = jnp.maximum(h @ wo + bo, 0.0)
    return out.reshape(b, num_blocks * 4, -1)


def _reference_bf16(x, context, params, num_layers):
    # Same math with the kernel's bf16-matmul / f32-accumulate numerics.
    wi, bi, wc, bc, rbw1, rbb1, rbw2, rbb2, wo, bo = params
    xf, cf, b, num_blocks = _flatten_inputs(x, context)
    bf, f32 = jnp.bfloat16, jnp.float32
    xf = xf.astype(bf); cf = cf.astype(bf)
    h = jnp.dot(xf, wi.astype(bf), preferred_element_type=f32) + bi
    h = h + (jnp.dot(cf, wc.astype(bf), preferred_element_type=f32) + bc)
    for l in range(num_layers):
        z = jnp.maximum(jnp.dot(h.astype(bf), rbw1[l].astype(bf),
                                preferred_element_type=f32) + rbb1[l], 0.0)
        h = jnp.dot(z.astype(bf), rbw2[l].astype(bf),
                    preferred_element_type=f32) + rbb2[l] + h
    out = jnp.maximum(jnp.dot(h.astype(bf), wo.astype(bf),
                              preferred_element_type=f32) + bo, 0.0)
    return out.reshape(b, num_blocks * 4, -1)


if __name__ == "__main__":
    B = 2
    CHANNELS = 4
    PATCH_SIZE = 4            # x_p_area = 16, input_dim = 64, output_dim = 192
    X_NUM_BLOCKS = 16
    NUM_BLOCKS = 16           # == x_num_blocks => context_dim = p_area * channels
    P_AREA = 16
    HIDDEN_DIM = 32
    NUM_LAYERS = 2
    CONTEXT_DIM = (NUM_BLOCKS // X_NUM_BLOCKS) * P_AREA * CHANNELS  # 64

    key = jax.random.PRNGKey(0)
    kx, kc, kp = jax.random.split(key, 3)
    x = jax.random.normal(kx, (B, CHANNELS, X_NUM_BLOCKS, PATCH_SIZE * PATCH_SIZE),
                          dtype=jnp.float32)
    context = jax.random.normal(kc, (B, CHANNELS, NUM_BLOCKS, P_AREA), dtype=jnp.float32)
    params = init_params(kp, PATCH_SIZE, CHANNELS, CONTEXT_DIM, HIDDEN_DIM, NUM_LAYERS)

    fwd = jax.jit(simple_conditional_mapping, static_argnames=("num_layers", "tile_m"))

    # Default tiling (single 32-row tile at this tiny size; 512-row tiles at scale).
    out = jax.block_until_ready(fwd(x, context, params, num_layers=NUM_LAYERS))
    # Forced small tile: exercises the multi-step pipelined grid (grid=(2,)),
    # resident weights across steps, and row padding + output slicing.
    out_tiled = jax.block_until_ready(
        fwd(x, context, params, num_layers=NUM_LAYERS, tile_m=24))

    ref_bf16 = _reference_bf16(x, context, params, NUM_LAYERS)
    ref_f32 = _reference_f32(x, context, params, NUM_LAYERS)

    expected_last = (3 * PATCH_SIZE ** 2 * CHANNELS * X_NUM_BLOCKS) // (NUM_BLOCKS * 4)
    assert out.shape == (B, NUM_BLOCKS * 4, expected_last)
    assert out_tiled.shape == out.shape
    # Exact-numerics check (bf16 MXU / f32 accumulation in both kernel and ref).
    assert jnp.allclose(out, ref_bf16, atol=5e-3, rtol=5e-3)
    assert jnp.allclose(out_tiled, ref_bf16, atol=5e-3, rtol=5e-3)
    # Loose semantic check against the pure-f32 reference (bf16 matmul precision).
    assert jnp.allclose(out, ref_f32, atol=1e-1, rtol=1e-1)

    print("KERNEL_OK")
</pallas_src>

<mosaic_0001>
module attributes {stable_mosaic.version = 11 : i64} {
  func.func @_mapping_kernel(%arg0: i32, %arg1: memref<32x64xbf16, #tpu.memory_space<vmem>>, %arg2: memref<32x64xbf16, #tpu.memory_space<vmem>>, %arg3: memref<64x128xbf16, #tpu.memory_space<vmem>>, %arg4: memref<1x128xf32, #tpu.memory_space<vmem>>, %arg5: memref<64x128xbf16, #tpu.memory_space<vmem>>, %arg6: memref<1x128xf32, #tpu.memory_space<vmem>>, %arg7: memref<2x128x128xbf16, #tpu.memory_space<vmem>>, %arg8: memref<2x1x128xf32, #tpu.memory_space<vmem>>, %arg9: memref<2x128x128xbf16, #tpu.memory_space<vmem>>, %arg10: memref<2x1x128xf32, #tpu.memory_space<vmem>>, %arg11: memref<128x256xbf16, #tpu.memory_space<vmem>>, %arg12: memref<1x256xf32, #tpu.memory_space<vmem>>, %arg13: memref<32x256xf32, #tpu.memory_space<vmem>>) attributes {dimension_semantics = [#tpu.dimension_semantics<parallel>], iteration_bounds = array<i64: 1>, scalar_prefetch = 0 : i64, scratch_operands = 0 : i64, tpu.core_type = #tpu.core_type<tc>, window_params = [{transform_indices = @transform_0, window_bounds = array<i64: 32, 64>}, {transform_indices = @transform_1, window_bounds = array<i64: 32, 64>}, {pipeline_mode = #tpu.pipeline_mode<synchronous>, transform_indices = @transform_2, window_bounds = array<i64: 64, 128>}, {pipeline_mode = #tpu.pipeline_mode<synchronous>, transform_indices = @transform_3, window_bounds = array<i64: 1, 128>}, {pipeline_mode = #tpu.pipeline_mode<synchronous>, transform_indices = @transform_4, window_bounds = array<i64: 64, 128>}, {pipeline_mode = #tpu.pipeline_mode<synchronous>, transform_indices = @transform_5, window_bounds = array<i64: 1, 128>}, {pipeline_mode = #tpu.pipeline_mode<synchronous>, transform_indices = @transform_6, window_bounds = array<i64: 2, 128, 128>}, {pipeline_mode = #tpu.pipeline_mode<synchronous>, transform_indices = @transform_7, window_bounds = array<i64: 2, 1, 128>}, {pipeline_mode = #tpu.pipeline_mode<synchronous>, transform_indices = @transform_8, window_bounds = array<i64: 2, 128, 128>}, {pipeline_mode = #tpu.pipeline_mode<synchronous>, transform_indices = @transform_9, window_bounds = array<i64: 2, 1, 128>}, {pipeline_mode = #tpu.pipeline_mode<synchronous>, transform_indices = @transform_10, window_bounds = array<i64: 128, 256>}, {pipeline_mode = #tpu.pipeline_mode<synchronous>, transform_indices = @transform_11, window_bounds = array<i64: 1, 256>}, {transform_indices = @transform_12, window_bounds = array<i64: 32, 256>}]} {
    %c0 = arith.constant 0 : index
    %c0_0 = arith.constant 0 : index
    %0 = vector.load %arg1[%c0, %c0_0] : memref<32x64xbf16, #tpu.memory_space<vmem>>, vector<32x64xbf16>
    %c0_1 = arith.constant 0 : index
    %c0_2 = arith.constant 0 : index
    %1 = vector.load %arg2[%c0_1, %c0_2] : memref<32x64xbf16, #tpu.memory_space<vmem>>, vector<32x64xbf16>
    %c0_3 = arith.constant 0 : index
    %c0_4 = arith.constant 0 : index
    %2 = vector.load %arg3[%c0_3, %c0_4] : memref<64x128xbf16, #tpu.memory_space<vmem>>, vector<64x128xbf16>
    %cst = arith.constant dense<0.000000e+00> : vector<32x128xf32>
    %3 = tpu.matmul %0, %2, %cst {dimension_numbers = #tpu.dot_dimension_numbers<[1], [0], [0], [1], [0, 0, 1, 1], [], []>} : vector<32x64xbf16>, vector<64x128xbf16>, vector<32x128xf32> -> vector<32x128xf32>
    %c0_5 = arith.constant 0 : index
    %c0_6 = arith.constant 0 : index
    %4 = vector.load %arg4[%c0_5, %c0_6] : memref<1x128xf32, #tpu.memory_space<vmem>>, vector<1x128xf32>
    %5 = vector.broadcast %4 : vector<1x128xf32> to vector<32x128xf32>
    %6 = arith.addf %3, %5 : vector<32x128xf32>
    %c0_7 = arith.constant 0 : index
    %c0_8 = arith.constant 0 : index
    %7 = vector.load %arg5[%c0_7, %c0_8] : memref<64x128xbf16, #tpu.memory_space<vmem>>, vector<64x128xbf16>
    %cst_9 = arith.constant dense<0.000000e+00> : vector<32x128xf32>
    %8 = tpu.matmul %1, %7, %cst_9 {dimension_numbers = #tpu.dot_dimension_numbers<[1], [0], [0], [1], [0, 0, 1, 1], [], []>} : vector<32x64xbf16>, vector<64x128xbf16>, vector<32x128xf32> -> vector<32x128xf32>
    %c0_10 = arith.constant 0 : index
    %c0_11 = arith.constant 0 : index
    %9 = vector.load %arg6[%c0_10, %c0_11] : memref<1x128xf32, #tpu.memory_space<vmem>>, vector<1x128xf32>
    %10 = vector.broadcast %9 : vector<1x128xf32> to vector<32x128xf32>
    %11 = arith.addf %8, %10 : vector<32x128xf32>
    %12 = arith.addf %6, %11 : vector<32x128xf32>
    %13 = arith.truncf %12 : vector<32x128xf32> to vector<32x128xbf16>
    %c0_12 = arith.constant 0 : index
    %c0_13 = arith.constant 0 : index
    %c0_14 = arith.constant 0 : index
    %14 = vector.load %arg7[%c0_12, %c0_13, %c0_14] : memref<2x128x128xbf16, #tpu.memory_space<vmem>>, vector<1x128x128xbf16>
    %15 = vector.shape_cast %14 : vector<1x128x128xbf16> to vector<128x128xbf16>
    %cst_15 = arith.constant dense<0.000000e+00> : vector<32x128xf32>
    %16 = tpu.matmul %13, %15, %cst_15 {dimension_numbers = #tpu.dot_dimension_numbers<[1], [0], [0], [1], [0, 0, 1, 1], [], []>} : vector<32x128xbf16>, vector<128x128xbf16>, vector<32x128xf32> -> vector<32x128xf32>
    %c0_16 = arith.constant 0 : index
    %c0_17 = arith.constant 0 : index
    %c0_18 = arith.constant 0 : index
    %17 = vector.load %arg8[%c0_16, %c0_17, %c0_18] : memref<2x1x128xf32, #tpu.memory_space<vmem>>, vector<1x1x128xf32>
    %18 = vector.shape_cast %17 : vector<1x1x128xf32> to vector<1x128xf32>
    %19 = vector.broadcast %18 : vector<1x128xf32> to vector<32x128xf32>
    %20 = arith.addf %16, %19 : vector<32x128xf32>
    %cst_19 = arith.constant 0.000000e+00 : f32
    %21 = vector.broadcast %cst_19 : f32 to vector<32x128xf32>
    %22 = arith.maximumf %20, %21 : vector<32x128xf32>
    %23 = arith.truncf %22 : vector<32x128xf32> to vector<32x128xbf16>
    %c0_20 = arith.constant 0 : index
    %c0_21 = arith.constant 0 : index
    %c0_22 = arith.constant 0 : index
    %24 = vector.load %arg9[%c0_20, %c0_21, %c0_22] : memref<2x128x128xbf16, #tpu.memory_space<vmem>>, vector<1x128x128xbf16>
    %25 = vector.shape_cast %24 : vector<1x128x128xbf16> to vector<128x128xbf16>
    %cst_23 = arith.constant dense<0.000000e+00> : vector<32x128xf32>
    %26 = tpu.matmul %23, %25, %cst_23 {dimension_numbers = #tpu.dot_dimension_numbers<[1], [0], [0], [1], [0, 0, 1, 1], [], []>} : vector<32x128xbf16>, vector<128x128xbf16>, vector<32x128xf32> -> vector<32x128xf32>
    %c0_24 = arith.constant 0 : index
    %c0_25 = arith.constant 0 : index
    %c0_26 = arith.constant 0 : index
    %27 = vector.load %arg10[%c0_24, %c0_25, %c0_26] : memref<2x1x128xf32, #tpu.memory_space<vmem>>, vector<1x1x128xf32>
    %28 = vector.shape_cast %27 : vector<1x1x128xf32> to vector<1x128xf32>
    %29 = vector.broadcast %28 : vector<1x128xf32> to vector<32x128xf32>
    %30 = arith.addf %26, %29 : vector<32x128xf32>
    %31 = arith.addf %30, %12 : vector<32x128xf32>
    %32 = arith.truncf %31 : vector<32x128xf32> to vector<32x128xbf16>
    %c1 = arith.constant 1 : index
    %c0_27 = arith.constant 0 : index
    %c0_28 = arith.constant 0 : index
    %33 = vector.load %arg7[%c1, %c0_27, %c0_28] : memref<2x128x128xbf16, #tpu.memory_space<vmem>>, vector<1x128x128xbf16>
    %34 = vector.shape_cast %33 : vector<1x128x128xbf16> to vector<128x128xbf16>
    %cst_29 = arith.constant dense<0.000000e+00> : vector<32x128xf32>
    %35 = tpu.matmul %32, %34, %cst_29 {dimension_numbers = #tpu.dot_dimension_numbers<[1], [0], [0], [1], [0, 0, 1, 1], [], []>} : vector<32x128xbf16>, vector<128x128xbf16>, vector<32x128xf32> -> vector<32x128xf32>
    %c1_30 = arith.constant 1 : index
    %c0_31 = arith.constant 0 : index
    %c0_32 = arith.constant 0 : index
    %36 = vector.load %arg8[%c1_30, %c0_31, %c0_32] : memref<2x1x128xf32, #tpu.memory_space<vmem>>, vector<1x1x128xf32>
    %37 = vector.shape_cast %36 : vector<1x1x128xf32> to vector<1x128xf32>
    %38 = vector.broadcast %37 : vector<1x128xf32> to vector<32x128xf32>
    %39 = arith.addf %35, %38 : vector<32x128xf32>
    %cst_33 = arith.constant 0.000000e+00 : f32
    %40 = vector.broadcast %cst_33 : f32 to vector<32x128xf32>
    %41 = arith.maximumf %39, %40 : vector<32x128xf32>
    %42 = arith.truncf %41 : vector<32x128xf32> to vector<32x128xbf16>
    %c1_34 = arith.constant 1 : index
    %c0_35 = arith.constant 0 : index
    %c0_36 = arith.constant 0 : index
    %43 = vector.load %arg9[%c1_34, %c0_35, %c0_36] : memref<2x128x128xbf16, #tpu.memory_space<vmem>>, vector<1x128x128xbf16>
    %44 = vector.shape_cast %43 : vector<1x128x128xbf16> to vector<128x128xbf16>
    %cst_37 = arith.constant dense<0.000000e+00> : vector<32x128xf32>
    %45 = tpu.matmul %42, %44, %cst_37 {dimension_numbers = #tpu.dot_dimension_numbers<[1], [0], [0], [1], [0, 0, 1, 1], [], []>} : vector<32x128xbf16>, vector<128x128xbf16>, vector<32x128xf32> -> vector<32x128xf32>
    %c1_38 = arith.constant 1 : index
    %c0_39 = arith.constant 0 : index
    %c0_40 = arith.constant 0 : index
    %46 = vector.load %arg10[%c1_38, %c0_39, %c0_40] : memref<2x1x128xf32, #tpu.memory_space<vmem>>, vector<1x1x128xf32>
    %47 = vector.shape_cast %46 : vector<1x1x128xf32> to vector<1x128xf32>
    %48 = vector.broadcast %47 : vector<1x128xf32> to vector<32x128xf32>
    %49 = arith.addf %45, %48 : vector<32x128xf32>
    %50 = arith.addf %49, %31 : vector<32x128xf32>
    %51 = arith.truncf %50 : vector<32x128xf32> to vector<32x128xbf16>
    %c0_41 = arith.constant 0 : index
    %c0_42 = arith.constant 0 : index
    %52 = vector.load %arg11[%c0_41, %c0_42] : memref<128x256xbf16, #tpu.memory_space<vmem>>, vector<128x256xbf16>
    %cst_43 = arith.constant dense<0.000000e+00> : vector<32x256xf32>
    %53 = tpu.matmul %51, %52, %cst_43 {dimension_numbers = #tpu.dot_dimension_numbers<[1], [0], [0], [1], [0, 0, 1, 1], [], []>} : vector<32x128xbf16>, vector<128x256xbf16>, vector<32x256xf32> -> vector<32x256xf32>
    %c0_44 = arith.constant 0 : index
    %c0_45 = arith.constant 0 : index
    %54 = vector.load %arg12[%c0_44, %c0_45] : memref<1x256xf32, #tpu.memory_space<vmem>>, vector<1x256xf32>
    %55 = vector.broadcast %54 : vector<1x256xf32> to vector<32x256xf32>
    %56 = arith.addf %53, %55 : vector<32x256xf32>
    %cst_46 = arith.constant 0.000000e+00 : f32
    %57 = vector.broadcast %cst_46 : f32 to vector<32x256xf32>
    %58 = arith.maximumf %56, %57 : vector<32x256xf32>
    %c0_47 = arith.constant 0 : index
    %c0_48 = arith.constant 0 : index
    %59 = vector.load %arg13[%c0_47, %c0_48] : memref<32x256xf32, #tpu.memory_space<vmem>>, vector<32x256xf32>
    tpu.vector_store %arg13[%c0_47, %c0_48], %58 {strides = array<i32>} : memref<32x256xf32, #tpu.memory_space<vmem>>, vector<32x256xf32>,
    return
  }
  func.func @transform_0(%arg0: i32) -> (i32, i32) {
    %c0_i32 = arith.constant 0 : i32
    %c0_i32_0 = arith.constant 0 : i32
    return %arg0, %c0_i32 : i32, i32
  }
  func.func @transform_1(%arg0: i32) -> (i32, i32) {
    %c0_i32 = arith.constant 0 : i32
    %c0_i32_0 = arith.constant 0 : i32
    return %arg0, %c0_i32 : i32, i32
  }
  func.func @transform_2(%arg0: i32) -> (i32, i32) {
    %c0_i32 = arith.constant 0 : i32
    %c0_i32_0 = arith.constant 0 : i32
    %c0_i32_1 = arith.constant 0 : i32
    return %c0_i32, %c0_i32_0 : i32, i32
  }
  func.func @transform_3(%arg0: i32) -> (i32, i32) {
    %c0_i32 = arith.constant 0 : i32
    %c0_i32_0 = arith.constant 0 : i32
    %c0_i32_1 = arith.constant 0 : i32
    return %c0_i32, %c0_i32_0 : i32, i32
  }
  func.func @transform_4(%arg0: i32) -> (i32, i32) {
    %c0_i32 = arith.constant 0 : i32
    %c0_i32_0 = arith.constant 0 : i32
    %c0_i32_1 = arith.constant 0 : i32
    return %c0_i32, %c0_i32_0 : i32, i32
  }
  func.func @transform_5(%arg0: i32) -> (i32, i32) {
    %c0_i32 = arith.constant 0 : i32
    %c0_i32_0 = arith.constant 0 : i32
    %c0_i32_1 = arith.constant 0 : i32
    return %c0_i32, %c0_i32_0 : i32, i32
  }
  func.func @transform_6(%arg0: i32) -> (i32, i32, i32) {
    %c0_i32 = arith.constant 0 : i32
    %c0_i32_0 = arith.constant 0 : i32
    %c0_i32_1 = arith.constant 0 : i32
    %c0_i32_2 = arith.constant 0 : i32
    return %c0_i32, %c0_i32_0, %c0_i32_1 : i32, i32, i32
  }
  func.func @transform_7(%arg0: i32) -> (i32, i32, i32) {
    %c0_i32 = arith.constant 0 : i32
    %c0_i32_0 = arith.constant 0 : i32
    %c0_i32_1 = arith.constant 0 : i32
    %c0_i32_2 = arith.constant 0 : i32
    return %c0_i32, %c0_i32_0, %c0_i32_1 : i32, i32, i32
  }
  func.func @transform_8(%arg0: i32) -> (i32, i32, i32) {
    %c0_i32 = arith.constant 0 : i32
    %c0_i32_0 = arith.constant 0 : i32
    %c0_i32_1 = arith.constant 0 : i32
    %c0_i32_2 = arith.constant 0 : i32
    return %c0_i32, %c0_i32_0, %c0_i32_1 : i32, i32, i32
  }
  func.func @transform_9(%arg0: i32) -> (i32, i32, i32) {
    %c0_i32 = arith.constant 0 : i32
    %c0_i32_0 = arith.constant 0 : i32
    %c0_i32_1 = arith.constant 0 : i32
    %c0_i32_2 = arith.constant 0 : i32
    return %c0_i32, %c0_i32_0, %c0_i32_1 : i32, i32, i32
  }
  func.func @transform_10(%arg0: i32) -> (i32, i32) {
    %c0_i32 = arith.constant 0 : i32
    %c0_i32_0 = arith.constant 0 : i32
    %c0_i32_1 = arith.constant 0 : i32
    return %c0_i32, %c0_i32_0 : i32, i32
  }
  func.func @transform_11(%arg0: i32) -> (i32, i32) {
    %c0_i32 = arith.constant 0 : i32
    %c0_i32_0 = arith.constant 0 : i32
    %c0_i32_1 = arith.constant 0 : i32
    return %c0_i32, %c0_i32_0 : i32, i32
  }
  func.func @transform_12(%arg0: i32) -> (i32, i32) {
    %c0_i32 = arith.constant 0 : i32
    %c0_i32_0 = arith.constant 0 : i32
    return %arg0, %c0_i32 : i32, i32
  }
}

</mosaic_0001>

<bundles_post_ra>
// kernel: simple_conditional_mapping.1
= control target key start
LH: loop header
LB: loop body
LE: loop exit
PB: predicated region body
PF: predicated region fallthrough
CT: control target
= control target key end

     0   :  { %vm99_vm0 = vcmask 523264   ;;  %s1610_s2 = inlined_call_operand.vmem [shape: bf16[64,128], index: 2, kind: input, shape index: {}]   ;;  %s1611_s0 = inlined_call_operand.vmem [shape: bf16[32,64], index: 0, kind: input, shape index: {}]   ;;  %s1612_s4 = inlined_call_operand.vmem [shape: bf16[64,128], index: 4, kind: input, shape index: {}]   ;;  %s1613_s1 = inlined_call_operand.vmem [shape: bf16[32,64], index: 1, kind: input, shape index: {}]   ;;  %s1614_s6 = inlined_call_operand.vmem [shape: bf16[2,128,128], index: 6, kind: input, shape index: {}]   ;;  %s1615_s8 = inlined_call_operand.vmem [shape: bf16[2,128,128], index: 8, kind: input, shape index: {}]   ;;  %s1616_s5 = inlined_call_operand.vmem [shape: f32[1,128], index: 5, kind: input, shape index: {}]   ;;  %s1617_s3 = inlined_call_operand.vmem [shape: f32[1,128], index: 3, kind: input, shape index: {}]   ;;  %s1618_s7 = inlined_call_operand.vmem [shape: f32[2,1,128], index: 7, kind: input, shape index: {}]   ;;  %s1619_s9 = inlined_call_operand.vmem [shape: f32[2,1,128], index: 9, kind: input, shape index: {}]   ;;  %s1620_s10 = inlined_call_operand.vmem [shape: bf16[128,256], index: 10, kind: input, shape index: {}]   ;;  %s1621_s11 = inlined_call_operand.vmem [shape: f32[1,256], index: 11, kind: input, shape index: {}]   ;;  %s1622_s12 = inlined_call_operand.vmem [shape: f32[32,256], index: 12, kind: output, shape index: {}]  }
   0x1   :  { %v1215_v0 = vld [vmem:[%s1610_s2 + $0x18] sm:$0xff]   ;;  %v1216_v1 = vld [vmem:[%s1610_s2 + $0x10] sm:$0xff]   ;;  %v1217_v2 = vld [vmem:[%s1610_s2 + $0x8] sm:$0xff]  }
   0x2   :  { %1110 = vmatprep.subr.bf16.mxu1 %v1215_v0  ;;  %v1219_v3 = vld [vmem:[%s1611_s0] sm:$0xff]   ;;  %v1221_v5 = vld [vmem:[%s1612_s4 + $0x18] sm:$0xff]   ;;  %v1220_v6 = vld [vmem:[%s1611_s0 + $0x8] sm:$0xff]  }
   0x3   :  { %1111 = vmatpush3.bf16.msra.mxu1 %v1215_v0  ;;  %1118 = vmatprep.mubr.msk.bf16.mxu1 %vm99_vm0, %v1219_v3  ;;  %v1218_v4 = vld [vmem:[%s1610_s2] sm:$0xff]   ;;  %v1227_v7 = vld [vmem:[%s1614_s6 + $0x38] sm:$0xff]   ;;  %v1222_v9 = vld [vmem:[%s1612_s4 + $0x10] sm:$0xff]  }
   0x4   :  { %1112 = vmatprep.subr.bf16.mxu1 %v1216_v1  ;;  %v1225_v8 = vld [vmem:[%s1613_s1] sm:$0xff]   ;;  %1134 = vmatprep.subr.bf16.mxu0 %v1227_v7  ;;  %v1223_v10 = vld [vmem:[%s1612_s4 + $0x8] sm:$0xff]   ;;  %v1228_v13 = vld [vmem:[%s1614_s6 + $0x30] sm:$0xff]  }
   0x5   :  { %1135 = vmatpush3.bf16.msra.mxu0 %v1227_v7  ;;  %v1224_v11 = vld [vmem:[%s1612_s4] sm:$0xff]   ;;  %v1226_v12 = vld [vmem:[%s1613_s1 + $0x8] sm:$0xff]   ;;  %v1231_v16 = vld [vmem:[%s1614_s6 + $0x18] sm:$0xff]  }
   0x6   :  { %1136 = vmatprep.subr.bf16.mxu0 %v1228_v13  ;;  %v1229_v14 = vld [vmem:[%s1614_s6 + $0x28] sm:$0xff]   ;;  %v1230_v15 = vld [vmem:[%s1614_s6 + $0x20] sm:$0xff]   ;;  %v1232_v17 = vld [vmem:[%s1614_s6 + $0x10] sm:$0xff]  }
   0x7   :  { %1113 = vmatpush3.bf16.msra.mxu1 %v1216_v1  ;;  %v1233_v18 = vld [vmem:[%s1614_s6 + $0x8] sm:$0xff]   ;;  %v1234_v19 = vld [vmem:[%s1614_s6] sm:$0xff]   ;;  %v1235_v20 = vld [vmem:[%s1615_s8 + $0x38] sm:$0xff]  }
   0x8   :  { %1114 = vmatprep.subr.bf16.mxu1 %v1217_v2  ;;  %v1236_v21 = vld [vmem:[%s1615_s8 + $0x30] sm:$0xff]   ;;  %v1237_v22 = vld [vmem:[%s1615_s8 + $0x28] sm:$0xff]   ;;  %v1238_v23 = vld [vmem:[%s1615_s8 + $0x20] sm:$0xff]  }
   0x9   :  { %1137 = vmatpush3.bf16.msra.mxu0 %v1228_v13  ;;  %v1239_v24 = vld [vmem:[%s1615_s8 + $0x18] sm:$0xff]   ;;  %v963_v31 = vld [vmem:[%s1616_s5] ss:$0 sm:$0xff]  ;;  %v1240_v49 = vld [vmem:[%s1615_s8 + $0x10] sm:$0xff]  }
   0xa   :  { %1138 = vmatprep.subr.bf16.mxu0 %v1229_v14  ;;  %v954_v32 = vld [vmem:[%s1617_s3] ss:$0 sm:$0xff]  ;;  %v1241_v50 = vld [vmem:[%s1615_s8 + $0x8] sm:$0xff]   ;;  %v1243_v52 = vld [vmem:[%s1614_s6 + $0x78] sm:$0xff]  }
   0xb   :  { %1115 = vmatpush3.bf16.msra.mxu1 %v1217_v2  ;;  %v1242_v51 = vld [vmem:[%s1615_s8] sm:$0xff]   ;;  %v1244_v53 = vld [vmem:[%s1614_s6 + $0x70] sm:$0xff]   ;;  %v1245_v54 = vld [vmem:[%s1614_s6 + $0x68] sm:$0xff]  }
   0xc   :  { %1116 = vmatprep.subr.bf16.mxu1 %v1218_v4  ;;  %v1246_v55 = vld [vmem:[%s1614_s6 + $0x60] sm:$0xff]   ;;  %v1247_v56 = vld [vmem:[%s1614_s6 + $0x58] sm:$0xff]   ;;  %v1253_v13 = vld [vmem:[%s1615_s8 + $0x68] sm:$0xff]  }
   0xd   :  { %1139 = vmatpush3.bf16.msra.mxu0 %v1229_v14  ;;  %v972_v59 = vld [vmem:[%s1618_s7] ss:$0 sm:$0xff] }
   0xe   :  { %1140 = vmatprep.subr.bf16.mxu0 %v1230_v15  ;;  %v1254_v14 = vld [vmem:[%s1615_s8 + $0x60] sm:$0xff]  }
   0xf   :  { %1117 = vmatpush3.bf16.msra.mxu1 %v1218_v4 }
  0x10   :  { %1122 = vmatprep.subr.bf16.mxu1 %v1221_v5 }
  0x11   :  { %1141 = vmatpush3.bf16.msra.mxu0 %v1230_v15  ;;  %v1255_v15 = vld [vmem:[%s1615_s8 + $0x58] sm:$0xff]  }
  0x12   :  { %1119 = vmatmul.mubr.msk.bf16.vlgmr.msra.gmra.mxu1 %vm99_vm0, %v1220_v6  ;;  %1142 = vmatprep.subr.bf16.mxu0 %v1231_v16 }
  0x13   :  { %1123 = vmatpush3.bf16.msra.mxu1 %v1221_v5  ;;  %1130 = vmatprep.mubr.msk.bf16.mxu1 %vm99_vm0, %v1225_v8  ;;  %v1248_v8 = vld [vmem:[%s1614_s6 + $0x50] sm:$0xff]  }
  0x14   :  { %1124 = vmatprep.subr.bf16.mxu1 %v1222_v9 }
  0x15   :  { %1143 = vmatpush3.bf16.msra.mxu0 %v1231_v16 }
  0x16   :  { %1144 = vmatprep.subr.bf16.mxu0 %v1232_v17 }
  0x17   :  { %1125 = vmatpush3.bf16.msra.mxu1 %v1222_v9  ;;  %v1249_v9 = vld [vmem:[%s1614_s6 + $0x48] sm:$0xff]  }
  0x18   :  { %1126 = vmatprep.subr.bf16.mxu1 %v1223_v10 }
  0x19   :  { %1145 = vmatpush3.bf16.msra.mxu0 %v1232_v17 }
  0x1a   :  { %1146 = vmatprep.subr.bf16.mxu0 %v1233_v18 }
  0x1b   :  { %1127 = vmatpush3.bf16.msra.mxu1 %v1223_v10  ;;  %v1250_v10 = vld [vmem:[%s1614_s6 + $0x40] sm:$0xff]  }
  0x1c   :  { %1128 = vmatprep.subr.bf16.mxu1 %v1224_v11 }
  0x1d   :  { %1147 = vmatpush3.bf16.msra.mxu0 %v1233_v18  ;;  %v981_v18 = vld [vmem:[%s1619_s9] ss:$0 sm:$0xff] }
  0x1e   :  { %1148 = vmatprep.subr.bf16.mxu0 %v1234_v19 }
  0x1f   :  { %1129 = vmatpush3.bf16.msra.mxu1 %v1224_v11  ;;  %v1251_v11 = vld [vmem:[%s1615_s8 + $0x78] sm:$0xff]  }
  0x20   :  { %1154 = vmatprep.subr.bf16.mxu1 %v1235_v20 }
  0x21   :  { %1149 = vmatpush3.bf16.msra.mxu0 %v1234_v19 }
  0x22   :  { %1131 = vmatmul.mubr.msk.bf16.vlgmr.msra.gmra.mxu1 %vm99_vm0, %v1226_v12  ;;  %1174 = vmatprep.subr.bf16.mxu0 %v1243_v52  ;;  %v1252_v12 = vld [vmem:[%s1615_s8 + $0x70] sm:$0xff]  }
  0x23   :  { %1155 = vmatpush3.bf16.msra.mxu1 %v1235_v20 }
  0x24   :  { %1156 = vmatprep.subr.bf16.mxu1 %v1236_v21 }
  0x27   :  { %1157 = vmatpush3.bf16.msra.mxu1 %v1236_v21 }
  0x28   :  { %1158 = vmatprep.subr.bf16.mxu1 %v1237_v22 }
  0x2b   :  { %1159 = vmatpush3.bf16.msra.mxu1 %v1237_v22 }
  0x2c   :  { %1160 = vmatprep.subr.bf16.mxu1 %v1238_v23 }
  0x2f   :  { %1161 = vmatpush3.bf16.msra.mxu1 %v1238_v23 }
  0x30   :  { %1162 = vmatprep.subr.bf16.mxu1 %v1239_v24 }
  0x33   :  { %1163 = vmatpush3.bf16.msra.mxu1 %v1239_v24 }
  0x34   :  { %1164 = vmatprep.subr.bf16.mxu1 %v1240_v49 }
  0x37   :  { %1165 = vmatpush3.bf16.msra.mxu1 %v1240_v49 }
  0x38   :  { %1166 = vmatprep.subr.bf16.mxu1 %v1241_v50 }
  0x3b   :  { %1167 = vmatpush3.bf16.msra.mxu1 %v1241_v50 }
  0x3c   :  { %1168 = vmatprep.subr.bf16.mxu1 %v1242_v51 }
  0x3f   :  { %1169 = vmatpush3.bf16.msra.mxu1 %v1242_v51 }
  0x40   :  { %1194 = vmatprep.subr.bf16.mxu1 %v1251_v11 }
  0xd2   :  { %v1120_v25 = vpop.f32.mrf.mxu1 }
  0xd3   :  { %v149_v42 = vadd.f32 %v1120_v25, %v954_v32 }
  0xd4   :  { %v140_v26 = vpop.f32.mrf.mxu1 }
  0xd5   :  { %v141_v39 = vadd.f32 %v954_v32, %v140_v26 }
  0xd6   :  { %v1121_v27 = vpop.f32.mrf.mxu1 }
  0xd7   :  { %v152_v36 = vadd.f32 %v1121_v27, %v954_v32 }
  0xd8   :  { %v143_v28 = vpop.f32.mrf.mxu1 }
  0xd9   :  { %v144_v40 = vadd.f32 %v954_v32, %v143_v28  ;;  %v1257_v32 = vld [vmem:[%s1615_s8 + $0x48] sm:$0xff]  }
  0xe2   :  { %v1132_v29 = vpop.f32.mrf.mxu1 }
  0xe3   :  { %v253_v37 = vadd.f32 %v1132_v29, %v963_v31 }
  0xe4   :  { %v244_v30 = vpop.f32.mrf.mxu1 }
  0xe5   :  { %v245_v34 = vadd.f32 %v963_v31, %v244_v30  ;;  %v1440_v46 = vadd.f32 %v253_v37, %v149_v42  ;;  %v1262_v37 = vld [vmem:[%s1620_s10 + $0x60] ss:$8 sps:$4 sm:$0xff]   ;;  %v1273_v42 = vld [vmem:[%s1620_s10 + $0x34] ss:$8 sps:$4 sm:$0xff]  }
  0xe6   :  { %v1133_v33 = vpop.f32.mrf.mxu1 }
  0xe7   :  { %v256_v35 = vadd.f32 %v1133_v33, %v963_v31  ;;  %v1436_v44 = vadd.f32 %v245_v34, %v141_v39  ;;  %v1258_v33 = vld [vmem:[%s1615_s8 + $0x40] sm:$0xff]   ;;  %v1259_v34 = vld [vmem:[%s1620_s10 + $0x70] ss:$8 sps:$4 sm:$0xff]  }
  0xe8   :  { %v247_v38 = vpop.f32.mrf.mxu1  ;;  %v1265_v39 = vld [vmem:[%s1620_s10 + $0x50] ss:$8 sps:$4 sm:$0xff]  }
  0xe9   :  { %v248_v41 = vadd.f32 %v963_v31, %v247_v38  ;;  %v1434_v43 = vadd.f32 %v256_v35, %v152_v36  ;;  %v1256_v31 = vld [vmem:[%s1615_s8 + $0x50] sm:$0xff]   ;;  %v1264_v36 = vld [vmem:[%s1620_s10 + $0x64] ss:$8 sps:$4 sm:$0xff]  }
  0xea   :  { %v1261_v35 = vld [vmem:[%s1620_s10 + $0x74] ss:$8 sps:$4 sm:$0xff]  }
  0xeb   :  { %v1438_v45 = vadd.f32 %v248_v41, %v144_v40  ;;  %v264_v48 = vpack.c.bf16 %v1434_v43, %v1440_v46  ;;  %v1267_v38 = vld [vmem:[%s1620_s10 + $0x54] ss:$8 sps:$4 sm:$0xff]   ;;  %v1270_v40 = vld [vmem:[%s1620_s10 + $0x44] ss:$8 sps:$4 sm:$0xff]   ;;  %v1268_v41 = vld [vmem:[%s1620_s10 + $0x40] ss:$8 sps:$4 sm:$0xff]  }
  0xed   :  { %v263_v47 = vpack.c.bf16 %v1438_v45, %v1436_v44 }
  0xef   :  { %1150 = vmatprep.mubr.bf16.mxu0 %v263_v47 }
  0xf0   :  { %1151 = vmatmul.mubr.bf16.vlgmr.msra.gmra.mxu0 %v264_v48 }
  0xf1   :  { %1175 = vmatpush3.bf16.msra.mxu0 %v1243_v52 }
  0xf2   :  { %1176 = vmatprep.subr.bf16.mxu0 %v1244_v53 }
  0xf5   :  { %1177 = vmatpush3.bf16.msra.mxu0 %v1244_v53 }
  0xf6   :  { %1178 = vmatprep.subr.bf16.mxu0 %v1245_v54 }
  0xf9   :  { %1179 = vmatpush3.bf16.msra.mxu0 %v1245_v54 }
  0xfa   :  { %1180 = vmatprep.subr.bf16.mxu0 %v1246_v55 }
  0xfd   :  { %1181 = vmatpush3.bf16.msra.mxu0 %v1246_v55 }
  0xfe   :  { %1182 = vmatprep.subr.bf16.mxu0 %v1247_v56 }
 0x101   :  { %1183 = vmatpush3.bf16.msra.mxu0 %v1247_v56 }
 0x102   :  { %1184 = vmatprep.subr.bf16.mxu0 %v1248_v8 }
 0x105   :  { %1185 = vmatpush3.bf16.msra.mxu0 %v1248_v8 }
 0x106   :  { %1186 = vmatprep.subr.bf16.mxu0 %v1249_v9 }
 0x109   :  { %1187 = vmatpush3.bf16.msra.mxu0 %v1249_v9 }
 0x10a   :  { %1188 = vmatprep.subr.bf16.mxu0 %v1250_v10 }
 0x10d   :  { %1189 = vmatpush3.bf16.msra.mxu0 %v1250_v10 }
 0x10e   :  { %881 = vmatprep.subr.bf16.mxu0 %v1261_v35 }
 0x1b0   :  { %v1152_v57 = vpop.f32.mrf.mxu0 }
 0x1b1   :  { %v379_v63 = vadd.f32 %v1152_v57, %v972_v59 }
 0x1b2   :  { %v370_v58 = vpop.f32.mrf.mxu0 }
 0x1b3   :  { %v371_v61 = vadd.f32 %v972_v59, %v370_v58  ;;  %v387_v5 = vmax.f32 %v379_v63, 0.0  ;;  %v1282_v63 = vld [vmem:[%s1620_s10 + $0x4] ss:$8 sps:$4 sm:$0xff]  }
 0x1b4   :  { %v1153_v60 = vpop.f32.mrf.mxu0 }
 0x1b5   :  { %v382_v62 = vadd.f32 %v1153_v60, %v972_v59  ;;  %v385_v3 = vmax.f32 %v371_v61, 0.0  ;;  %v1274_v60 = vld [vmem:[%s1620_s10 + $0x20] ss:$8 sps:$4 sm:$0xff]   ;;  %v1279_v61 = vld [vmem:[%s1620_s10 + $0x14] ss:$8 sps:$4 sm:$0xff]  }
 0x1b6   :  { %v373_v0 = vpop.f32.mrf.mxu0 }
 0x1b7   :  { %v374_v1 = vadd.f32 %v972_v59, %v373_v0  ;;  %v388_v2 = vmax.f32 %v382_v62, 0.0  ;;  %v1276_v59 = vld [vmem:[%s1620_s10 + $0x24] ss:$8 sps:$4 sm:$0xff]   ;;  %v1277_v62 = vld [vmem:[%s1620_s10 + $0x10] ss:$8 sps:$4 sm:$0xff]  }
 0x1b8   :  { %v1280_v0 = vld [vmem:[%s1620_s10] ss:$8 sps:$4 sm:$0xff]  }
 0x1b9   :  { %v386_v4 = vmax.f32 %v374_v1, 0.0  ;;  %v390_v7 = vpack.c.bf16 %v388_v2, %v387_v5  ;;  %v1283_v1 = vmov 0  }
 0x1bb   :  { %v389_v6 = vpack.c.bf16 %v386_v4, %v385_v3  ;;  %v1033_v4 = vld [vmem:[%s1619_s9 + $0x1] ss:$0 sm:$0xff] }
 0x1bd   :  { %1170 = vmatprep.mubr.bf16.mxu1 %v389_v6 }
 0x1be   :  { %1171 = vmatmul.mubr.bf16.vlgmr.msra.gmra.mxu1 %v390_v7 }
 0x1bf   :  { %1195 = vmatpush3.bf16.msra.mxu1 %v1251_v11 }
 0x1c0   :  { %1196 = vmatprep.subr.bf16.mxu1 %v1252_v12 }
 0x1c3   :  { %1197 = vmatpush3.bf16.msra.mxu1 %v1252_v12 }
 0x1c4   :  { %1198 = vmatprep.subr.bf16.mxu1 %v1253_v13 }
 0x1c7   :  { %1199 = vmatpush3.bf16.msra.mxu1 %v1253_v13 }
 0x1c8   :  { %1200 = vmatprep.subr.bf16.mxu1 %v1254_v14 }
 0x1cb   :  { %1201 = vmatpush3.bf16.msra.mxu1 %v1254_v14 }
 0x1cc   :  { %1202 = vmatprep.subr.bf16.mxu1 %v1255_v15 }
 0x1cf   :  { %1203 = vmatpush3.bf16.msra.mxu1 %v1255_v15 }
 0x1d0   :  { %1204 = vmatprep.subr.bf16.mxu1 %v1256_v31 }
 0x1d3   :  { %1205 = vmatpush3.bf16.msra.mxu1 %v1256_v31 }
 0x1d4   :  { %1206 = vmatprep.subr.bf16.mxu1 %v1257_v32 }
 0x1d7   :  { %1207 = vmatpush3.bf16.msra.mxu1 %v1257_v32 }
 0x1d8   :  { %1208 = vmatprep.subr.bf16.mxu1 %v1258_v33 }
 0x1db   :  { %1209 = vmatpush3.bf16.msra.mxu1 %v1258_v33 }
 0x27e   :  { %v1172_v16 = vpop.f32.mrf.mxu1 }
 0x27f   :  { %v505_v22 = vadd.f32 %v1172_v16, %v981_v18 }
 0x280   :  { %v496_v17 = vpop.f32.mrf.mxu1 }
 0x281   :  { %v497_v20 = vadd.f32 %v981_v18, %v496_v17  ;;  %v1510_v28 = vadd.f32 %v505_v22, %v1440_v46  ;;  %v1007_v46 = vld [vmem:[%s1618_s7 + $0x1] ss:$0 sm:$0xff]  ;;  %v791_v17 = vlaneseq }
 0x282   :  { %v1173_v19 = vpop.f32.mrf.mxu1 }
 0x283   :  { %v508_v21 = vadd.f32 %v1173_v19, %v981_v18  ;;  %v1504_v26 = vadd.f32 %v497_v20, %v1436_v44  ;;  %v789_v20 = vld [vmem:[%s1621_s11] sm:$0x3] }
 0x284   :  { %v499_v23 = vpop.f32.mrf.mxu1 }
 0x285   :  { %v500_v24 = vadd.f32 %v981_v18, %v499_v23  ;;  %v1501_v25 = vadd.f32 %v508_v21, %v1434_v43  ;;  %v1271_v43 = vld [vmem:[%s1620_s10 + $0x30] ss:$8 sps:$4 sm:$0xff]   ;;  %v792_v18 = vshrl.u32 %v791_v17, 7 }
 0x287   :  { %v1507_v27 = vadd.f32 %v500_v24, %v1438_v45  ;;  %v516_v30 = vpack.c.bf16 %v1501_v25, %v1510_v28  ;;  %v793_v19 = vsub.s32 0, %v792_v18  ;;  %v797_v21 = vsub.s32 1, %v792_v18 }
 0x289   :  { %v515_v29 = vpack.c.bf16 %v1507_v27, %v1504_v26  ;;  %v794_v22 = vrot.slane %v789_v20, %v793_v19  ;;  %v798_v23 = vrot.slane %v789_v20, %v797_v21 }
 0x28b   :  { %1190 = vmatprep.mubr.bf16.mxu0 %v515_v29 }
 0x28c   :  { %1191 = vmatmul.mubr.bf16.vlgmr.msra.gmra.mxu0 %v516_v30 }
 0x28d   :  { %882 = vmatpush1.bf16.msra.mxu0 %v1259_v34  ;;  %913 = vmatprep.mubr.bf16.mxu0 %v1283_v1 }
 0x28e   :  { %883 = vmatprep.subr.bf16.mxu0 %v1264_v36 }
 0x291   :  { %884 = vmatpush1.bf16.msra.mxu0 %v1262_v37 }
 0x292   :  { %885 = vmatprep.subr.bf16.mxu0 %v1267_v38 }
 0x295   :  { %886 = vmatpush1.bf16.msra.mxu0 %v1265_v39 }
 0x296   :  { %887 = vmatprep.subr.bf16.mxu0 %v1270_v40 }
 0x299   :  { %888 = vmatpush1.bf16.msra.mxu0 %v1268_v41 }
 0x29a   :  { %889 = vmatprep.subr.bf16.mxu0 %v1273_v42 }
 0x29d   :  { %890 = vmatpush1.bf16.msra.mxu0 %v1271_v43 }
 0x29e   :  { %891 = vmatprep.subr.bf16.mxu0 %v1276_v59 }
 0x2a1   :  { %892 = vmatpush1.bf16.msra.mxu0 %v1274_v60 }
 0x2a2   :  { %893 = vmatprep.subr.bf16.mxu0 %v1279_v61 }
 0x2a5   :  { %894 = vmatpush1.bf16.msra.mxu0 %v1277_v62 }
 0x2a6   :  { %895 = vmatprep.subr.bf16.mxu0 %v1282_v63 }
 0x2a9   :  { %896 = vmatpush1.bf16.msra.mxu0 %v1280_v0 }
 0x34c   :  { %v1192_v44 = vpop.f32.mrf.mxu0 }
 0x34d   :  { %v633_v50 = vadd.f32 %v1192_v44, %v1007_v46 }
 0x34e   :  { %v624_v45 = vpop.f32.mrf.mxu0 }
 0x34f   :  { %v625_v48 = vadd.f32 %v1007_v46, %v624_v45  ;;  %v641_v56 = vmax.f32 %v633_v50, 0.0 }
 0x350   :  { %v1193_v47 = vpop.f32.mrf.mxu0 }
 0x351   :  { %v636_v49 = vadd.f32 %v1193_v47, %v1007_v46  ;;  %v639_v54 = vmax.f32 %v625_v48, 0.0 }
 0x352   :  { %v627_v51 = vpop.f32.mrf.mxu0 }
 0x353   :  { %v628_v52 = vadd.f32 %v1007_v46, %v627_v51  ;;  %v642_v53 = vmax.f32 %v636_v49, 0.0 }
 0x355   :  { %v640_v55 = vmax.f32 %v628_v52, 0.0  ;;  %v644_v58 = vpack.c.bf16 %v642_v53, %v641_v56 }
 0x357   :  { %v643_v57 = vpack.c.bf16 %v640_v55, %v639_v54 }
 0x359   :  { %1210 = vmatprep.mubr.bf16.mxu1 %v643_v57 }
 0x35a   :  { %1211 = vmatmul.mubr.bf16.vlgmr.msra.gmra.mxu1 %v644_v58 }
 0x41a   :  { %v1212_v2 = vpop.f32.mrf.mxu1 }
 0x41b   :  { %v761_v13 = vadd.f32 %v1212_v2, %v1033_v4 }
 0x41c   :  { %v752_v3 = vpop.f32.mrf.mxu1 }
 0x41d   :  { %v753_v6 = vadd.f32 %v1033_v4, %v752_v3  ;;  %v769_v15 = vadd.f32 %v761_v13, %v1510_v28 }
 0x41e   :  { %v1213_v5 = vpop.f32.mrf.mxu1 }
 0x41f   :  { %v767_v9 = vadd.f32 %v753_v6, %v1504_v26  ;;  %v764_v11 = vadd.f32 %v1213_v5, %v1033_v4 }
 0x420   :  { %v755_v7 = vpop.f32.mrf.mxu1 }
 0x421   :  { %v756_v8 = vadd.f32 %v1033_v4, %v755_v7  ;;  %v770_v14 = vadd.f32 %v764_v11, %v1501_v25 }
 0x423   :  { %v768_v10 = vadd.f32 %v756_v8, %v1507_v27  ;;  %v772_v16 = vpack.c.bf16 %v770_v14, %v769_v15 }
 0x425   :  { %v771_v12 = vpack.c.bf16 %v768_v10, %v767_v9 }
 0x427   :  { %914 = vmatmul.mubr.bf16.vlgmr.msra.gmra.mxu0 %v771_v12 }
 0x428   :  { %923 = vmatprep.mubr.bf16.mxu0 %v1283_v1 }
 0x42f   :  { %924 = vmatmul.mubr.bf16.gmra.mxu0 %v772_v16 }
 0x4e7   :  { %v915_v24 = vpop.f32.mrf.mxu0 }
 0x4e8   :  { %v916_v26 = vadd.f32 %v915_v24, %v794_v22 }
 0x4e9   :  { %v917_v27 = vpop.f32.mrf.mxu0 }
 0x4ea   :  { %v934_v29 = vmax.f32 %v916_v26, 0.0  ;;  %v918_v30 = vadd.f32 %v917_v27, %v798_v23 }
 0x4eb   :  { %v919_v25 = vpop.f32.mrf.mxu0 }
 0x4ec   :  { %942 = vst [vmem:[%s1622_s12] sm:$0xff] %v934_v29  ;;  %v935_v28 = vmax.f32 %v918_v30, 0.0  ;;  %v920_v31 = vadd.f32 %v919_v25, %v794_v22 }
 0x4ed   :  { %v921_v32 = vpop.f32.mrf.mxu0 }
 0x4ee   :  { %943 = vst [vmem:[%s1622_s12 + $0x8] sm:$0xff] %v935_v28  ;;  %v936_v33 = vmax.f32 %v920_v31, 0.0  ;;  %v922_v34 = vadd.f32 %v921_v32, %v798_v23 }
 0x4ef   :  { %v925_v35 = vpop.f32.mrf.mxu0 }
 0x4f0   :  { %944 = vst [vmem:[%s1622_s12 + $0x10] sm:$0xff] %v936_v33  ;;  %v937_v36 = vmax.f32 %v922_v34, 0.0  ;;  %v926_v37 = vadd.f32 %v925_v35, %v794_v22 }
 0x4f1   :  { %v927_v38 = vpop.f32.mrf.mxu0 }
 0x4f2   :  { %945 = vst [vmem:[%s1622_s12 + $0x18] sm:$0xff] %v937_v36  ;;  %v938_v39 = vmax.f32 %v926_v37, 0.0  ;;  %v928_v40 = vadd.f32 %v927_v38, %v798_v23 }
 0x4f3   :  { %v929_v41 = vpop.f32.mrf.mxu0 }
 0x4f4   :  { %946 = vst [vmem:[%s1622_s12 + $0x20] sm:$0xff] %v938_v39  ;;  %v939_v42 = vmax.f32 %v928_v40, 0.0  ;;  %v930_v43 = vadd.f32 %v929_v41, %v794_v22 }
 0x4f5   :  { %v931_v44 = vpop.f32.mrf.mxu0 }
 0x4f6   :  { %947 = vst [vmem:[%s1622_s12 + $0x28] sm:$0xff] %v939_v42  ;;  %v940_v45 = vmax.f32 %v930_v43, 0.0  ;;  %v932_v46 = vadd.f32 %v931_v44, %v798_v23 }
 0x4f8   :  { %948 = vst [vmem:[%s1622_s12 + $0x30] sm:$0xff] %v940_v45  ;;  %v941_v47 = vmax.f32 %v932_v46, 0.0 }
 0x4fa   :  { %949 = vst [vmem:[%s1622_s12 + $0x38] sm:$0xff] %v941_v47 }

</bundles_post_ra>
